<compile_context>
chip_gen: v5e
topology: v5e:2x2
jax: 0.10.0
libtpu: 0.0.40
codegen_flags: <defaults>
</compile_context>

<pallas_src>
import jax
import jax.numpy as jnp
import numpy as np
from jax.experimental import pallas as pl
from jax.experimental.pallas import tpu as pltpu

# ---- model config (small, consistent with the module) ----------------------
B = 2          # batch
S = 8          # sequence length
D = 32         # cfg.dim_embed
H = 4          # cfg.num_heads
DH = D // H    # head dim
DFF = 64       # cfg.dim_ff (FFN hidden)
EPS = 1e-5     # nn.LayerNorm default eps

VW = max(3 * D, DFF)          # packed-vector slab width (96)
SCALE = 1.0 / float(np.sqrt(DH))


def encoder_layer_kernel(x_ref,        # (B*S, D)
                         wqkv_ref,     # (D, 3D)  [Wq | Wk | Wv]
                         wo_ref,       # (D, D)
                         w1_ref,       # (D, DFF)
                         w2_ref,       # (DFF, D)
                         vec_ref,      # (8, VW)  packed biases / LN params
                         o_ref):       # (B*S, D)
    x = x_ref[...]                     # (B*S, D), f32
    vecs = vec_ref[...]                # (8, VW)
    bqkv = vecs[0:1, :3 * D]           # (1, 3D)
    bo   = vecs[1:2, :D]
    b1   = vecs[2:3, :DFF]
    b2   = vecs[3:4, :D]
    g1   = vecs[4:5, :D]
    be1  = vecs[5:6, :D]
    g2   = vecs[6:7, :D]
    be2  = vecs[7:8, :D]

    # ---- fused QKV projection (single MXU matmul over the whole slab) -------
    qkv = jnp.dot(x, wqkv_ref[...], preferred_element_type=jnp.float32) + bqkv  # (B*S, 3D)

    # ---- multi-head self-attention (static loop over batch & head) ----------
    attn_rows = []
    for b in range(B):                             # batches must not mix in scores
        r0 = b * S
        attn_b = jnp.zeros((S, D), jnp.float32)
        for h in range(H):                         # static unroll over heads
            c = h * DH
            qh = qkv[r0:r0 + S, c:c + DH]                  # (S, DH)
            kh = qkv[r0:r0 + S, D + c:D + c + DH]          # (S, DH)
            vh = qkv[r0:r0 + S, 2 * D + c:2 * D + c + DH]  # (S, DH)
            # contract last axes directly: no explicit kh.T transpose
            scores = jax.lax.dot_general(
                qh, kh, (((1,), (1,)), ((), ())),
                preferred_element_type=jnp.float32) * SCALE            # (S, S)
            m = jnp.max(scores, axis=-1, keepdims=True)
            p = jnp.exp(scores - m)
            p = p * pl.reciprocal(jnp.sum(p, axis=-1, keepdims=True), approx=True)
            ctx_h = jnp.dot(p, vh, preferred_element_type=jnp.float32)  # (S, DH)
            # fold output projection into the head loop (no lane concat)
            attn_b = attn_b + jnp.dot(ctx_h, wo_ref[c:c + DH, :],
                                      preferred_element_type=jnp.float32)
        attn_rows.append(attn_b)
    attn = jnp.concatenate(attn_rows, axis=0) + bo          # sublane concat, (B*S, D)

    # ---- residual + LayerNorm1 ----------------------------------------------
    h1 = x + attn
    mu1 = jnp.mean(h1, axis=-1, keepdims=True)
    var1 = jnp.mean((h1 - mu1) ** 2, axis=-1, keepdims=True)
    h1n = (h1 - mu1) * jax.lax.rsqrt(var1 + EPS) * g1 + be1

    # ---- feed-forward network ------------------------------------------------
    f = jnp.dot(h1n, w1_ref[...], preferred_element_type=jnp.float32) + b1
    f = jnp.maximum(f, 0.0)
    f = jnp.dot(f, w2_ref[...], preferred_element_type=jnp.float32) + b2

    # ---- residual + LayerNorm2 ------------------------------------------------
    h2 = h1n + f
    mu2 = jnp.mean(h2, axis=-1, keepdims=True)
    var2 = jnp.mean((h2 - mu2) ** 2, axis=-1, keepdims=True)
    o_ref[...] = (h2 - mu2) * jax.lax.rsqrt(var2 + EPS) * g2 + be2


def encoder_layer(x, params):
    """x: (B, S, D) float32.  params: dict of weights (see init_params)."""
    Bsz, Sl, Dm = x.shape
    BS = Bsz * Sl

    # --- pack weights / vectors outside the kernel (layout plumbing) ---------
    wqkv = jnp.concatenate([params["wq"], params["wk"], params["wv"]], axis=1)  # (D, 3D)

    def row(vec, width):
        r = jnp.zeros((1, VW), jnp.float32)
        return r.at[0, :width].set(vec.reshape(-1))

    vecs = jnp.concatenate([
        row(jnp.concatenate([params["bq"][0], params["bk"][0], params["bv"][0]]), 3 * Dm),
        row(params["bo"][0], Dm),
        row(params["b1"][0], DFF),
        row(params["b2"][0], Dm),
        row(params["g1"][0], Dm),
        row(params["be1"][0], Dm),
        row(params["g2"][0], Dm),
        row(params["be2"][0], Dm),
    ], axis=0)                                                                  # (8, VW)

    x2 = x.reshape(BS, Dm)

    # Single grid step: whole problem (~40 KB) lives in VMEM; no weight
    # re-fetch / double-buffering across steps.
    # NOTE(v7x): for larger batch, restore grid=(Bsz,) with
    # dimension_semantics=("parallel",) so Mosaic can shard over both TCs.
    out = pl.pallas_call(
        encoder_layer_kernel,
        out_shape=jax.ShapeDtypeStruct((BS, Dm), jnp.float32),
        grid_spec=pltpu.PrefetchScalarGridSpec(
            num_scalar_prefetch=0,
            grid=(1,),
            in_specs=[
                pl.BlockSpec((BS, Dm), lambda i: (0, 0)),        # x (flattened)
                pl.BlockSpec((Dm, 3 * Dm), lambda i: (0, 0)),    # wqkv
                pl.BlockSpec((Dm, Dm), lambda i: (0, 0)),        # wo
                pl.BlockSpec((Dm, DFF), lambda i: (0, 0)),       # w1
                pl.BlockSpec((DFF, Dm), lambda i: (0, 0)),       # w2
                pl.BlockSpec((8, VW), lambda i: (0, 0)),         # packed vectors
            ],
            out_specs=pl.BlockSpec((BS, Dm), lambda i: (0, 0)),
        ),
        compiler_params=pltpu.CompilerParams(
            dimension_semantics=("arbitrary",)),
    )(x2, wqkv, params["wo"], params["w1"], params["w2"], vecs)
    return out.reshape(Bsz, Sl, Dm)


def init_params(key):
    ks = jax.random.split(key, 8)
    std = 0.02
    p = {
        "wq": std * jax.random.normal(ks[0], (D, D), jnp.float32),
        "wk": std * jax.random.normal(ks[1], (D, D), jnp.float32),
        "wv": std * jax.random.normal(ks[2], (D, D), jnp.float32),
        "wo": std * jax.random.normal(ks[3], (D, D), jnp.float32),
        "bq": jnp.zeros((1, D), jnp.float32),
        "bk": jnp.zeros((1, D), jnp.float32),
        "bv": jnp.zeros((1, D), jnp.float32),
        "bo": jnp.zeros((1, D), jnp.float32),
        "w1": std * jax.random.normal(ks[4], (D, DFF), jnp.float32),
        "b1": jnp.zeros((1, DFF), jnp.float32),
        "w2": std * jax.random.normal(ks[5], (DFF, D), jnp.float32),
        "b2": jnp.zeros((1, D), jnp.float32),
        "g1": jnp.ones((1, D), jnp.float32),
        "be1": jnp.zeros((1, D), jnp.float32),
        "g2": jnp.ones((1, D), jnp.float32),
        "be2": jnp.zeros((1, D), jnp.float32),
    }
    return p


def reference(x, p):
    """Pure-JAX reference matching the PyTorch forward semantics."""
    def ln(h, g, b):
        mu = h.mean(-1, keepdims=True)
        var = ((h - mu) ** 2).mean(-1, keepdims=True)
        return (h - mu) / jnp.sqrt(var + EPS) * g[0] + b[0]

    q = x @ p["wq"] + p["bq"][0]
    k = x @ p["wk"] + p["bk"][0]
    v = x @ p["wv"] + p["bv"][0]
    qh = q.reshape(B, S, H, DH).transpose(0, 2, 1, 3)
    kh = k.reshape(B, S, H, DH).transpose(0, 2, 1, 3)
    vh = v.reshape(B, S, H, DH).transpose(0, 2, 1, 3)
    scores = jnp.einsum("bhqd,bhkd->bhqk", qh, kh) / jnp.sqrt(jnp.float32(DH))
    probs = jax.nn.softmax(scores, axis=-1)
    ctx = jnp.einsum("bhqk,bhkd->bhqd", probs, vh).transpose(0, 2, 1, 3).reshape(B, S, D)
    attn = ctx @ p["wo"] + p["bo"][0]
    h = ln(x + attn, p["g1"], p["be1"])
    f = jnp.maximum(h @ p["w1"] + p["b1"][0], 0.0) @ p["w2"] + p["b2"][0]
    return ln(h + f, p["g2"], p["be2"])


if __name__ == "__main__":
    key = jax.random.PRNGKey(0)
    kx, kp = jax.random.split(key)
    x = jax.random.normal(kx, (B, S, D), jnp.float32)
    params = init_params(kp)

    out = encoder_layer(x, params)
    out = jax.block_until_ready(out)

    ref = reference(x, params)
    # approx=True reciprocal (EUP vrcp) error propagates at << 1e-4 here
    # because attention magnitudes are tiny relative to the residual stream.
    np.testing.assert_allclose(np.asarray(out), np.asarray(ref), rtol=1e-4, atol=1e-4)
    print("KERNEL_OK")
</pallas_src>

<mosaic_0001>
module attributes {stable_mosaic.version = 11 : i64} {
  func.func @encoder_layer_kernel(%arg0: i32, %arg1: memref<16x32xf32, #tpu.memory_space<vmem>>, %arg2: memref<32x96xf32, #tpu.memory_space<vmem>>, %arg3: memref<32x32xf32, #tpu.memory_space<vmem>>, %arg4: memref<32x64xf32, #tpu.memory_space<vmem>>, %arg5: memref<64x32xf32, #tpu.memory_space<vmem>>, %arg6: memref<8x96xf32, #tpu.memory_space<vmem>>, %arg7: memref<16x32xf32, #tpu.memory_space<vmem>>) attributes {dimension_semantics = [#tpu.dimension_semantics<arbitrary>], iteration_bounds = array<i64: 1>, scalar_prefetch = 0 : i64, scratch_operands = 0 : i64, tpu.core_type = #tpu.core_type<tc>, window_params = [{pipeline_mode = #tpu.pipeline_mode<synchronous>, transform_indices = @transform_0, window_bounds = array<i64: 16, 32>}, {pipeline_mode = #tpu.pipeline_mode<synchronous>, transform_indices = @transform_1, window_bounds = array<i64: 32, 96>}, {pipeline_mode = #tpu.pipeline_mode<synchronous>, transform_indices = @transform_2, window_bounds = array<i64: 32, 32>}, {pipeline_mode = #tpu.pipeline_mode<synchronous>, transform_indices = @transform_3, window_bounds = array<i64: 32, 64>}, {pipeline_mode = #tpu.pipeline_mode<synchronous>, transform_indices = @transform_4, window_bounds = array<i64: 64, 32>}, {pipeline_mode = #tpu.pipeline_mode<synchronous>, transform_indices = @transform_5, window_bounds = array<i64: 8, 96>}, {pipeline_mode = #tpu.pipeline_mode<synchronous>, transform_indices = @transform_6, window_bounds = array<i64: 16, 32>}]} {
    %c0 = arith.constant 0 : index
    %c0_0 = arith.constant 0 : index
    %0 = vector.load %arg1[%c0, %c0_0] : memref<16x32xf32, #tpu.memory_space<vmem>>, vector<16x32xf32>
    %c0_1 = arith.constant 0 : index
    %c0_2 = arith.constant 0 : index
    %1 = vector.load %arg6[%c0_1, %c0_2] : memref<8x96xf32, #tpu.memory_space<vmem>>, vector<8x96xf32>
    %2 = vector.extract_strided_slice %1 {offsets = [0, 0], sizes = [1, 96], strides = [1, 1]} : vector<8x96xf32> to vector<1x96xf32>
    %3 = vector.extract_strided_slice %1 {offsets = [1, 0], sizes = [1, 32], strides = [1, 1]} : vector<8x96xf32> to vector<1x32xf32>
    %4 = vector.extract_strided_slice %1 {offsets = [2, 0], sizes = [1, 64], strides = [1, 1]} : vector<8x96xf32> to vector<1x64xf32>
    %5 = vector.extract_strided_slice %1 {offsets = [3, 0], sizes = [1, 32], strides = [1, 1]} : vector<8x96xf32> to vector<1x32xf32>
    %6 = vector.extract_strided_slice %1 {offsets = [4, 0], sizes = [1, 32], strides = [1, 1]} : vector<8x96xf32> to vector<1x32xf32>
    %7 = vector.extract_strided_slice %1 {offsets = [5, 0], sizes = [1, 32], strides = [1, 1]} : vector<8x96xf32> to vector<1x32xf32>
    %8 = vector.extract_strided_slice %1 {offsets = [6, 0], sizes = [1, 32], strides = [1, 1]} : vector<8x96xf32> to vector<1x32xf32>
    %9 = vector.extract_strided_slice %1 {offsets = [7, 0], sizes = [1, 32], strides = [1, 1]} : vector<8x96xf32> to vector<1x32xf32>
    %c0_3 = arith.constant 0 : index
    %c0_4 = arith.constant 0 : index
    %10 = vector.load %arg2[%c0_3, %c0_4] : memref<32x96xf32, #tpu.memory_space<vmem>>, vector<32x96xf32>
    %cst = arith.constant dense<0.000000e+00> : vector<16x96xf32>
    %11 = tpu.matmul %0, %10, %cst {dimension_numbers = #tpu.dot_dimension_numbers<[1], [0], [0], [1], [0, 0, 1, 1], [], []>} : vector<16x32xf32>, vector<32x96xf32>, vector<16x96xf32> -> vector<16x96xf32>
    %12 = vector.broadcast %2 : vector<1x96xf32> to vector<16x96xf32>
    %13 = arith.addf %11, %12 : vector<16x96xf32>
    %cst_5 = arith.constant 0.000000e+00 : f32
    %14 = vector.broadcast %cst_5 : f32 to vector<8x32xf32>
    %15 = vector.extract_strided_slice %13 {offsets = [0, 0], sizes = [8, 8], strides = [1, 1]} : vector<16x96xf32> to vector<8x8xf32>
    %16 = vector.extract_strided_slice %13 {offsets = [0, 32], sizes = [8, 8], strides = [1, 1]} : vector<16x96xf32> to vector<8x8xf32>
    %17 = vector.extract_strided_slice %13 {offsets = [0, 64], sizes = [8, 8], strides = [1, 1]} : vector<16x96xf32> to vector<8x8xf32>
    %cst_6 = arith.constant dense<0.000000e+00> : vector<8x8xf32>
    %18 = tpu.matmul %15, %16, %cst_6 {dimension_numbers = #tpu.dot_dimension_numbers<[1], [1], [0], [0], [0, 0, 1, 0], [], []>} : vector<8x8xf32>, vector<8x8xf32>, vector<8x8xf32> -> vector<8x8xf32>
    %cst_7 = arith.constant 0.353553385 : f32
    %19 = vector.broadcast %cst_7 : f32 to vector<8x8xf32>
    %20 = arith.mulf %18, %19 : vector<8x8xf32>
    %cst_8 = arith.constant dense<0xFF800000> : vector<8xf32>
    %21 = vector.multi_reduction <maximumf>, %20, %cst_8 [1] : vector<8x8xf32> to vector<8xf32>
    %22 = vector.shape_cast %21 : vector<8xf32> to vector<8x1xf32>
    %23 = vector.broadcast %22 : vector<8x1xf32> to vector<8x8xf32>
    %24 = arith.subf %20, %23 : vector<8x8xf32>
    %25 = math.exp %24 : vector<8x8xf32>
    %cst_9 = arith.constant dense<0.000000e+00> : vector<8xf32>
    %26 = vector.multi_reduction <add>, %25, %cst_9 [1] : vector<8x8xf32> to vector<8xf32>
    %27 = vector.shape_cast %26 : vector<8xf32> to vector<8x1xf32>
    %28 = tpu.reciprocal %27 {approx = true} : vector<8x1xf32> -> vector<8x1xf32>
    %29 = vector.broadcast %28 : vector<8x1xf32> to vector<8x8xf32>
    %30 = arith.mulf %25, %29 : vector<8x8xf32>
    %cst_10 = arith.constant dense<0.000000e+00> : vector<8x8xf32>
    %31 = tpu.matmul %30, %17, %cst_10 {dimension_numbers = #tpu.dot_dimension_numbers<[1], [0], [0], [1], [0, 0, 1, 1], [], []>} : vector<8x8xf32>, vector<8x8xf32>, vector<8x8xf32> -> vector<8x8xf32>
    %c0_11 = arith.constant 0 : index
    %c0_12 = arith.constant 0 : index
    %32 = vector.load %arg3[%c0_11, %c0_12] : memref<32x32xf32, #tpu.memory_space<vmem>>, vector<8x32xf32>
    %cst_13 = arith.constant dense<0.000000e+00> : vector<8x32xf32>
    %33 = tpu.matmul %31, %32, %cst_13 {dimension_numbers = #tpu.dot_dimension_numbers<[1], [0], [0], [1], [0, 0, 1, 1], [], []>} : vector<8x8xf32>, vector<8x32xf32>, vector<8x32xf32> -> vector<8x32xf32>
    %34 = arith.addf %14, %33 : vector<8x32xf32>
    %35 = vector.extract_strided_slice %13 {offsets = [0, 8], sizes = [8, 8], strides = [1, 1]} : vector<16x96xf32> to vector<8x8xf32>
    %36 = vector.extract_strided_slice %13 {offsets = [0, 40], sizes = [8, 8], strides = [1, 1]} : vector<16x96xf32> to vector<8x8xf32>
    %37 = vector.extract_strided_slice %13 {offsets = [0, 72], sizes = [8, 8], strides = [1, 1]} : vector<16x96xf32> to vector<8x8xf32>
    %cst_14 = arith.constant dense<0.000000e+00> : vector<8x8xf32>
    %38 = tpu.matmul %35, %36, %cst_14 {dimension_numbers = #tpu.dot_dimension_numbers<[1], [1], [0], [0], [0, 0, 1, 0], [], []>} : vector<8x8xf32>, vector<8x8xf32>, vector<8x8xf32> -> vector<8x8xf32>
    %cst_15 = arith.constant 0.353553385 : f32
    %39 = vector.broadcast %cst_15 : f32 to vector<8x8xf32>
    %40 = arith.mulf %38, %39 : vector<8x8xf32>
    %cst_16 = arith.constant dense<0xFF800000> : vector<8xf32>
    %41 = vector.multi_reduction <maximumf>, %40, %cst_16 [1] : vector<8x8xf32> to vector<8xf32>
    %42 = vector.shape_cast %41 : vector<8xf32> to vector<8x1xf32>
    %43 = vector.broadcast %42 : vector<8x1xf32> to vector<8x8xf32>
    %44 = arith.subf %40, %43 : vector<8x8xf32>
    %45 = math.exp %44 : vector<8x8xf32>
    %cst_17 = arith.constant dense<0.000000e+00> : vector<8xf32>
    %46 = vector.multi_reduction <add>, %45, %cst_17 [1] : vector<8x8xf32> to vector<8xf32>
    %47 = vector.shape_cast %46 : vector<8xf32> to vector<8x1xf32>
    %48 = tpu.reciprocal %47 {approx = true} : vector<8x1xf32> -> vector<8x1xf32>
    %49 = vector.broadcast %48 : vector<8x1xf32> to vector<8x8xf32>
    %50 = arith.mulf %45, %49 : vector<8x8xf32>
    %cst_18 = arith.constant dense<0.000000e+00> : vector<8x8xf32>
    %51 = tpu.matmul %50, %37, %cst_18 {dimension_numbers = #tpu.dot_dimension_numbers<[1], [0], [0], [1], [0, 0, 1, 1], [], []>} : vector<8x8xf32>, vector<8x8xf32>, vector<8x8xf32> -> vector<8x8xf32>
    %c8 = arith.constant 8 : index
    %c0_19 = arith.constant 0 : index
    %52 = vector.load %arg3[%c8, %c0_19] : memref<32x32xf32, #tpu.memory_space<vmem>>, vector<8x32xf32>
    %cst_20 = arith.constant dense<0.000000e+00> : vector<8x32xf32>
    %53 = tpu.matmul %51, %52, %cst_20 {dimension_numbers = #tpu.dot_dimension_numbers<[1], [0], [0], [1], [0, 0, 1, 1], [], []>} : vector<8x8xf32>, vector<8x32xf32>, vector<8x32xf32> -> vector<8x32xf32>
    %54 = arith.addf %34, %53 : vector<8x32xf32>
    %55 = vector.extract_strided_slice %13 {offsets = [0, 16], sizes = [8, 8], strides = [1, 1]} : vector<16x96xf32> to vector<8x8xf32>
    %56 = vector.extract_strided_slice %13 {offsets = [0, 48], sizes = [8, 8], strides = [1, 1]} : vector<16x96xf32> to vector<8x8xf32>
    %57 = vector.extract_strided_slice %13 {offsets = [0, 80], sizes = [8, 8], strides = [1, 1]} : vector<16x96xf32> to vector<8x8xf32>
    %cst_21 = arith.constant dense<0.000000e+00> : vector<8x8xf32>
    %58 = tpu.matmul %55, %56, %cst_21 {dimension_numbers = #tpu.dot_dimension_numbers<[1], [1], [0], [0], [0, 0, 1, 0], [], []>} : vector<8x8xf32>, vector<8x8xf32>, vector<8x8xf32> -> vector<8x8xf32>
    %cst_22 = arith.constant 0.353553385 : f32
    %59 = vector.broadcast %cst_22 : f32 to vector<8x8xf32>
    %60 = arith.mulf %58, %59 : vector<8x8xf32>
    %cst_23 = arith.constant dense<0xFF800000> : vector<8xf32>
    %61 = vector.multi_reduction <maximumf>, %60, %cst_23 [1] : vector<8x8xf32> to vector<8xf32>
    %62 = vector.shape_cast %61 : vector<8xf32> to vector<8x1xf32>
    %63 = vector.broadcast %62 : vector<8x1xf32> to vector<8x8xf32>
    %64 = arith.subf %60, %63 : vector<8x8xf32>
    %65 = math.exp %64 : vector<8x8xf32>
    %cst_24 = arith.constant dense<0.000000e+00> : vector<8xf32>
    %66 = vector.multi_reduction <add>, %65, %cst_24 [1] : vector<8x8xf32> to vector<8xf32>
    %67 = vector.shape_cast %66 : vector<8xf32> to vector<8x1xf32>
    %68 = tpu.reciprocal %67 {approx = true} : vector<8x1xf32> -> vector<8x1xf32>
    %69 = vector.broadcast %68 : vector<8x1xf32> to vector<8x8xf32>
    %70 = arith.mulf %65, %69 : vector<8x8xf32>
    %cst_25 = arith.constant dense<0.000000e+00> : vector<8x8xf32>
    %71 = tpu.matmul %70, %57, %cst_25 {dimension_numbers = #tpu.dot_dimension_numbers<[1], [0], [0], [1], [0, 0, 1, 1], [], []>} : vector<8x8xf32>, vector<8x8xf32>, vector<8x8xf32> -> vector<8x8xf32>
    %c16 = arith.constant 16 : index
    %c0_26 = arith.constant 0 : index
    %72 = vector.load %arg3[%c16, %c0_26] : memref<32x32xf32, #tpu.memory_space<vmem>>, vector<8x32xf32>
    %cst_27 = arith.constant dense<0.000000e+00> : vector<8x32xf32>
    %73 = tpu.matmul %71, %72, %cst_27 {dimension_numbers = #tpu.dot_dimension_numbers<[1], [0], [0], [1], [0, 0, 1, 1], [], []>} : vector<8x8xf32>, vector<8x32xf32>, vector<8x32xf32> -> vector<8x32xf32>
    %74 = arith.addf %54, %73 : vector<8x32xf32>
    %75 = vector.extract_strided_slice %13 {offsets = [0, 24], sizes = [8, 8], strides = [1, 1]} : vector<16x96xf32> to vector<8x8xf32>
    %76 = vector.extract_strided_slice %13 {offsets = [0, 56], sizes = [8, 8], strides = [1, 1]} : vector<16x96xf32> to vector<8x8xf32>
    %77 = vector.extract_strided_slice %13 {offsets = [0, 88], sizes = [8, 8], strides = [1, 1]} : vector<16x96xf32> to vector<8x8xf32>
    %cst_28 = arith.constant dense<0.000000e+00> : vector<8x8xf32>
    %78 = tpu.matmul %75, %76, %cst_28 {dimension_numbers = #tpu.dot_dimension_numbers<[1], [1], [0], [0], [0, 0, 1, 0], [], []>} : vector<8x8xf32>, vector<8x8xf32>, vector<8x8xf32> -> vector<8x8xf32>
    %cst_29 = arith.constant 0.353553385 : f32
    %79 = vector.broadcast %cst_29 : f32 to vector<8x8xf32>
    %80 = arith.mulf %78, %79 : vector<8x8xf32>
    %cst_30 = arith.constant dense<0xFF800000> : vector<8xf32>
    %81 = vector.multi_reduction <maximumf>, %80, %cst_30 [1] : vector<8x8xf32> to vector<8xf32>
    %82 = vector.shape_cast %81 : vector<8xf32> to vector<8x1xf32>
    %83 = vector.broadcast %82 : vector<8x1xf32> to vector<8x8xf32>
    %84 = arith.subf %80, %83 : vector<8x8xf32>
    %85 = math.exp %84 : vector<8x8xf32>
    %cst_31 = arith.constant dense<0.000000e+00> : vector<8xf32>
    %86 = vector.multi_reduction <add>, %85, %cst_31 [1] : vector<8x8xf32> to vector<8xf32>
    %87 = vector.shape_cast %86 : vector<8xf32> to vector<8x1xf32>
    %88 = tpu.reciprocal %87 {approx = true} : vector<8x1xf32> -> vector<8x1xf32>
    %89 = vector.broadcast %88 : vector<8x1xf32> to vector<8x8xf32>
    %90 = arith.mulf %85, %89 : vector<8x8xf32>
    %cst_32 = arith.constant dense<0.000000e+00> : vector<8x8xf32>
    %91 = tpu.matmul %90, %77, %cst_32 {dimension_numbers = #tpu.dot_dimension_numbers<[1], [0], [0], [1], [0, 0, 1, 1], [], []>} : vector<8x8xf32>, vector<8x8xf32>, vector<8x8xf32> -> vector<8x8xf32>
    %c24 = arith.constant 24 : index
    %c0_33 = arith.constant 0 : index
    %92 = vector.load %arg3[%c24, %c0_33] : memref<32x32xf32, #tpu.memory_space<vmem>>, vector<8x32xf32>
    %cst_34 = arith.constant dense<0.000000e+00> : vector<8x32xf32>
    %93 = tpu.matmul %91, %92, %cst_34 {dimension_numbers = #tpu.dot_dimension_numbers<[1], [0], [0], [1], [0, 0, 1, 1], [], []>} : vector<8x8xf32>, vector<8x32xf32>, vector<8x32xf32> -> vector<8x32xf32>
    %94 = arith.addf %74, %93 : vector<8x32xf32>
    %cst_35 = arith.constant 0.000000e+00 : f32
    %95 = vector.broadcast %cst_35 : f32 to vector<8x32xf32>
    %96 = vector.extract_strided_slice %13 {offsets = [8, 0], sizes = [8, 8], strides = [1, 1]} : vector<16x96xf32> to vector<8x8xf32>
    %97 = vector.extract_strided_slice %13 {offsets = [8, 32], sizes = [8, 8], strides = [1, 1]} : vector<16x96xf32> to vector<8x8xf32>
    %98 = vector.extract_strided_slice %13 {offsets = [8, 64], sizes = [8, 8], strides = [1, 1]} : vector<16x96xf32> to vector<8x8xf32>
    %cst_36 = arith.constant dense<0.000000e+00> : vector<8x8xf32>
    %99 = tpu.matmul %96, %97, %cst_36 {dimension_numbers = #tpu.dot_dimension_numbers<[1], [1], [0], [0], [0, 0, 1, 0], [], []>} : vector<8x8xf32>, vector<8x8xf32>, vector<8x8xf32> -> vector<8x8xf32>
    %cst_37 = arith.constant 0.353553385 : f32
    %100 = vector.broadcast %cst_37 : f32 to vector<8x8xf32>
    %101 = arith.mulf %99, %100 : vector<8x8xf32>
    %cst_38 = arith.constant dense<0xFF800000> : vector<8xf32>
    %102 = vector.multi_reduction <maximumf>, %101, %cst_38 [1] : vector<8x8xf32> to vector<8xf32>
    %103 = vector.shape_cast %102 : vector<8xf32> to vector<8x1xf32>
    %104 = vector.broadcast %103 : vector<8x1xf32> to vector<8x8xf32>
    %105 = arith.subf %101, %104 : vector<8x8xf32>
    %106 = math.exp %105 : vector<8x8xf32>
    %cst_39 = arith.constant dense<0.000000e+00> : vector<8xf32>
    %107 = vector.multi_reduction <add>, %106, %cst_39 [1] : vector<8x8xf32> to vector<8xf32>
    %108 = vector.shape_cast %107 : vector<8xf32> to vector<8x1xf32>
    %109 = tpu.reciprocal %108 {approx = true} : vector<8x1xf32> -> vector<8x1xf32>
    %110 = vector.broadcast %109 : vector<8x1xf32> to vector<8x8xf32>
    %111 = arith.mulf %106, %110 : vector<8x8xf32>
    %cst_40 = arith.constant dense<0.000000e+00> : vector<8x8xf32>
    %112 = tpu.matmul %111, %98, %cst_40 {dimension_numbers = #tpu.dot_dimension_numbers<[1], [0], [0], [1], [0, 0, 1, 1], [], []>} : vector<8x8xf32>, vector<8x8xf32>, vector<8x8xf32> -> vector<8x8xf32>
    %c0_41 = arith.constant 0 : index
    %c0_42 = arith.constant 0 : index
    %113 = vector.load %arg3[%c0_41, %c0_42] : memref<32x32xf32, #tpu.memory_space<vmem>>, vector<8x32xf32>
    %cst_43 = arith.constant dense<0.000000e+00> : vector<8x32xf32>
    %114 = tpu.matmul %112, %113, %cst_43 {dimension_numbers = #tpu.dot_dimension_numbers<[1], [0], [0], [1], [0, 0, 1, 1], [], []>} : vector<8x8xf32>, vector<8x32xf32>, vector<8x32xf32> -> vector<8x32xf32>
    %115 = arith.addf %95, %114 : vector<8x32xf32>
    %116 = vector.extract_strided_slice %13 {offsets = [8, 8], sizes = [8, 8], strides = [1, 1]} : vector<16x96xf32> to vector<8x8xf32>
    %117 = vector.extract_strided_slice %13 {offsets = [8, 40], sizes = [8, 8], strides = [1, 1]} : vector<16x96xf32> to vector<8x8xf32>
    %118 = vector.extract_strided_slice %13 {offsets = [8, 72], sizes = [8, 8], strides = [1, 1]} : vector<16x96xf32> to vector<8x8xf32>
    %cst_44 = arith.constant dense<0.000000e+00> : vector<8x8xf32>
    %119 = tpu.matmul %116, %117, %cst_44 {dimension_numbers = #tpu.dot_dimension_numbers<[1], [1], [0], [0], [0, 0, 1, 0], [], []>} : vector<8x8xf32>, vector<8x8xf32>, vector<8x8xf32> -> vector<8x8xf32>
    %cst_45 = arith.constant 0.353553385 : f32
    %120 = vector.broadcast %cst_45 : f32 to vector<8x8xf32>
    %121 = arith.mulf %119, %120 : vector<8x8xf32>
    %cst_46 = arith.constant dense<0xFF800000> : vector<8xf32>
    %122 = vector.multi_reduction <maximumf>, %121, %cst_46 [1] : vector<8x8xf32> to vector<8xf32>
    %123 = vector.shape_cast %122 : vector<8xf32> to vector<8x1xf32>
    %124 = vector.broadcast %123 : vector<8x1xf32> to vector<8x8xf32>
    %125 = arith.subf %121, %124 : vector<8x8xf32>
    %126 = math.exp %125 : vector<8x8xf32>
    %cst_47 = arith.constant dense<0.000000e+00> : vector<8xf32>
    %127 = vector.multi_reduction <add>, %126, %cst_47 [1] : vector<8x8xf32> to vector<8xf32>
    %128 = vector.shape_cast %127 : vector<8xf32> to vector<8x1xf32>
    %129 = tpu.reciprocal %128 {approx = true} : vector<8x1xf32> -> vector<8x1xf32>
    %130 = vector.broadcast %129 : vector<8x1xf32> to vector<8x8xf32>
    %131 = arith.mulf %126, %130 : vector<8x8xf32>
    %cst_48 = arith.constant dense<0.000000e+00> : vector<8x8xf32>
    %132 = tpu.matmul %131, %118, %cst_48 {dimension_numbers = #tpu.dot_dimension_numbers<[1], [0], [0], [1], [0, 0, 1, 1], [], []>} : vector<8x8xf32>, vector<8x8xf32>, vector<8x8xf32> -> vector<8x8xf32>
    %c8_49 = arith.constant 8 : index
    %c0_50 = arith.constant 0 : index
    %133 = vector.load %arg3[%c8_49, %c0_50] : memref<32x32xf32, #tpu.memory_space<vmem>>, vector<8x32xf32>
    %cst_51 = arith.constant dense<0.000000e+00> : vector<8x32xf32>
    %134 = tpu.matmul %132, %133, %cst_51 {dimension_numbers = #tpu.dot_dimension_numbers<[1], [0], [0], [1], [0, 0, 1, 1], [], []>} : vector<8x8xf32>, vector<8x32xf32>, vector<8x32xf32> -> vector<8x32xf32>
    %135 = arith.addf %115, %134 : vector<8x32xf32>
    %136 = vector.extract_strided_slice %13 {offsets = [8, 16], sizes = [8, 8], strides = [1, 1]} : vector<16x96xf32> to vector<8x8xf32>
    %137 = vector.extract_strided_slice %13 {offsets = [8, 48], sizes = [8, 8], strides = [1, 1]} : vector<16x96xf32> to vector<8x8xf32>
    %138 = vector.extract_strided_slice %13 {offsets = [8, 80], sizes = [8, 8], strides = [1, 1]} : vector<16x96xf32> to vector<8x8xf32>
    %cst_52 = arith.constant dense<0.000000e+00> : vector<8x8xf32>
    %139 = tpu.matmul %136, %137, %cst_52 {dimension_numbers = #tpu.dot_dimension_numbers<[1], [1], [0], [0], [0, 0, 1, 0], [], []>} : vector<8x8xf32>, vector<8x8xf32>, vector<8x8xf32> -> vector<8x8xf32>
    %cst_53 = arith.constant 0.353553385 : f32
    %140 = vector.broadcast %cst_53 : f32 to vector<8x8xf32>
    %141 = arith.mulf %139, %140 : vector<8x8xf32>
    %cst_54 = arith.constant dense<0xFF800000> : vector<8xf32>
    %142 = vector.multi_reduction <maximumf>, %141, %cst_54 [1] : vector<8x8xf32> to vector<8xf32>
    %143 = vector.shape_cast %142 : vector<8xf32> to vector<8x1xf32>
    %144 = vector.broadcast %143 : vector<8x1xf32> to vector<8x8xf32>
    %145 = arith.subf %141, %144 : vector<8x8xf32>
    %146 = math.exp %145 : vector<8x8xf32>
    %cst_55 = arith.constant dense<0.000000e+00> : vector<8xf32>
    %147 = vector.multi_reduction <add>, %146, %cst_55 [1] : vector<8x8xf32> to vector<8xf32>
    %148 = vector.shape_cast %147 : vector<8xf32> to vector<8x1xf32>
    %149 = tpu.reciprocal %148 {approx = true} : vector<8x1xf32> -> vector<8x1xf32>
    %150 = vector.broadcast %149 : vector<8x1xf32> to vector<8x8xf32>
    %151 = arith.mulf %146, %150 : vector<8x8xf32>
    %cst_56 = arith.constant dense<0.000000e+00> : vector<8x8xf32>
    %152 = tpu.matmul %151, %138, %cst_56 {dimension_numbers = #tpu.dot_dimension_numbers<[1], [0], [0], [1], [0, 0, 1, 1], [], []>} : vector<8x8xf32>, vector<8x8xf32>, vector<8x8xf32> -> vector<8x8xf32>
    %c16_57 = arith.constant 16 : index
    %c0_58 = arith.constant 0 : index
    %153 = vector.load %arg3[%c16_57, %c0_58] : memref<32x32xf32, #tpu.memory_space<vmem>>, vector<8x32xf32>
    %cst_59 = arith.constant dense<0.000000e+00> : vector<8x32xf32>
    %154 = tpu.matmul %152, %153, %cst_59 {dimension_numbers = #tpu.dot_dimension_numbers<[1], [0], [0], [1], [0, 0, 1, 1], [], []>} : vector<8x8xf32>, vector<8x32xf32>, vector<8x32xf32> -> vector<8x32xf32>
    %155 = arith.addf %135, %154 : vector<8x32xf32>
    %156 = vector.extract_strided_slice %13 {offsets = [8, 24], sizes = [8, 8], strides = [1, 1]} : vector<16x96xf32> to vector<8x8xf32>
    %157 = vector.extract_strided_slice %13 {offsets = [8, 56], sizes = [8, 8], strides = [1, 1]} : vector<16x96xf32> to vector<8x8xf32>
    %158 = vector.extract_strided_slice %13 {offsets = [8, 88], sizes = [8, 8], strides = [1, 1]} : vector<16x96xf32> to vector<8x8xf32>
    %cst_60 = arith.constant dense<0.000000e+00> : vector<8x8xf32>
    %159 = tpu.matmul %156, %157, %cst_60 {dimension_numbers = #tpu.dot_dimension_numbers<[1], [1], [0], [0], [0, 0, 1, 0], [], []>} : vector<8x8xf32>, vector<8x8xf32>, vector<8x8xf32> -> vector<8x8xf32>
    %cst_61 = arith.constant 0.353553385 : f32
    %160 = vector.broadcast %cst_61 : f32 to vector<8x8xf32>
    %161 = arith.mulf %159, %160 : vector<8x8xf32>
    %cst_62 = arith.constant dense<0xFF800000> : vector<8xf32>
    %162 = vector.multi_reduction <maximumf>, %161, %cst_62 [1] : vector<8x8xf32> to vector<8xf32>
    %163 = vector.shape_cast %162 : vector<8xf32> to vector<8x1xf32>
    %164 = vector.broadcast %163 : vector<8x1xf32> to vector<8x8xf32>
    %165 = arith.subf %161, %164 : vector<8x8xf32>
    %166 = math.exp %165 : vector<8x8xf32>
    %cst_63 = arith.constant dense<0.000000e+00> : vector<8xf32>
    %167 = vector.multi_reduction <add>, %166, %cst_63 [1] : vector<8x8xf32> to vector<8xf32>
    %168 = vector.shape_cast %167 : vector<8xf32> to vector<8x1xf32>
    %169 = tpu.reciprocal %168 {approx = true} : vector<8x1xf32> -> vector<8x1xf32>
    %170 = vector.broadcast %169 : vector<8x1xf32> to vector<8x8xf32>
    %171 = arith.mulf %166, %170 : vector<8x8xf32>
    %cst_64 = arith.constant dense<0.000000e+00> : vector<8x8xf32>
    %172 = tpu.matmul %171, %158, %cst_64 {dimension_numbers = #tpu.dot_dimension_numbers<[1], [0], [0], [1], [0, 0, 1, 1], [], []>} : vector<8x8xf32>, vector<8x8xf32>, vector<8x8xf32> -> vector<8x8xf32>
    %c24_65 = arith.constant 24 : index
    %c0_66 = arith.constant 0 : index
    %173 = vector.load %arg3[%c24_65, %c0_66] : memref<32x32xf32, #tpu.memory_space<vmem>>, vector<8x32xf32>
    %cst_67 = arith.constant dense<0.000000e+00> : vector<8x32xf32>
    %174 = tpu.matmul %172, %173, %cst_67 {dimension_numbers = #tpu.dot_dimension_numbers<[1], [0], [0], [1], [0, 0, 1, 1], [], []>} : vector<8x8xf32>, vector<8x32xf32>, vector<8x32xf32> -> vector<8x32xf32>
    %175 = arith.addf %155, %174 : vector<8x32xf32>
    %176 = tpu.concatenate %94, %175 in 0 : vector<8x32xf32>, vector<8x32xf32> -> vector<16x32xf32>
    %177 = vector.broadcast %3 : vector<1x32xf32> to vector<16x32xf32>
    %178 = arith.addf %176, %177 : vector<16x32xf32>
    %179 = arith.addf %0, %178 : vector<16x32xf32>
    %cst_68 = arith.constant dense<0.000000e+00> : vector<16xf32>
    %180 = vector.multi_reduction <add>, %179, %cst_68 [1] : vector<16x32xf32> to vector<16xf32>
    %181 = vector.shape_cast %180 : vector<16xf32> to vector<16x1xf32>
    %cst_69 = arith.constant 3.200000e+01 : f32
    %182 = vector.broadcast %cst_69 : f32 to vector<16x1xf32>
    %183 = arith.divf %181, %182 : vector<16x1xf32>
    %184 = vector.broadcast %183 : vector<16x1xf32> to vector<16x32xf32>
    %185 = arith.subf %179, %184 : vector<16x32xf32>
    %186 = arith.mulf %185, %185 : vector<16x32xf32>
    %cst_70 = arith.constant dense<0.000000e+00> : vector<16xf32>
    %187 = vector.multi_reduction <add>, %186, %cst_70 [1] : vector<16x32xf32> to vector<16xf32>
    %188 = vector.shape_cast %187 : vector<16xf32> to vector<16x1xf32>
    %cst_71 = arith.constant 3.200000e+01 : f32
    %189 = vector.broadcast %cst_71 : f32 to vector<16x1xf32>
    %190 = arith.divf %188, %189 : vector<16x1xf32>
    %191 = vector.broadcast %183 : vector<16x1xf32> to vector<16x32xf32>
    %192 = arith.subf %179, %191 : vector<16x32xf32>
    %cst_72 = arith.constant 9.99999974E-6 : f32
    %193 = vector.broadcast %cst_72 : f32 to vector<16x1xf32>
    %194 = arith.addf %190, %193 : vector<16x1xf32>
    %195 = math.rsqrt %194 : vector<16x1xf32>
    %196 = vector.broadcast %195 : vector<16x1xf32> to vector<16x32xf32>
    %197 = arith.mulf %192, %196 : vector<16x32xf32>
    %198 = vector.broadcast %6 : vector<1x32xf32> to vector<16x32xf32>
    %199 = arith.mulf %197, %198 : vector<16x32xf32>
    %200 = vector.broadcast %7 : vector<1x32xf32> to vector<16x32xf32>
    %201 = arith.addf %199, %200 : vector<16x32xf32>
    %c0_73 = arith.constant 0 : index
    %c0_74 = arith.constant 0 : index
    %202 = vector.load %arg4[%c0_73, %c0_74] : memref<32x64xf32, #tpu.memory_space<vmem>>, vector<32x64xf32>
    %cst_75 = arith.constant dense<0.000000e+00> : vector<16x64xf32>
    %203 = tpu.matmul %201, %202, %cst_75 {dimension_numbers = #tpu.dot_dimension_numbers<[1], [0], [0], [1], [0, 0, 1, 1], [], []>} : vector<16x32xf32>, vector<32x64xf32>, vector<16x64xf32> -> vector<16x64xf32>
    %204 = vector.broadcast %4 : vector<1x64xf32> to vector<16x64xf32>
    %205 = arith.addf %203, %204 : vector<16x64xf32>
    %cst_76 = arith.constant 0.000000e+00 : f32
    %206 = vector.broadcast %cst_76 : f32 to vector<16x64xf32>
    %207 = arith.maximumf %205, %206 : vector<16x64xf32>
    %c0_77 = arith.constant 0 : index
    %c0_78 = arith.constant 0 : index
    %208 = vector.load %arg5[%c0_77, %c0_78] : memref<64x32xf32, #tpu.memory_space<vmem>>, vector<64x32xf32>
    %cst_79 = arith.constant dense<0.000000e+00> : vector<16x32xf32>
    %209 = tpu.matmul %207, %208, %cst_79 {dimension_numbers = #tpu.dot_dimension_numbers<[1], [0], [0], [1], [0, 0, 1, 1], [], []>} : vector<16x64xf32>, vector<64x32xf32>, vector<16x32xf32> -> vector<16x32xf32>
    %210 = vector.broadcast %5 : vector<1x32xf32> to vector<16x32xf32>
    %211 = arith.addf %209, %210 : vector<16x32xf32>
    %212 = arith.addf %201, %211 : vector<16x32xf32>
    %cst_80 = arith.constant dense<0.000000e+00> : vector<16xf32>
    %213 = vector.multi_reduction <add>, %212, %cst_80 [1] : vector<16x32xf32> to vector<16xf32>
    %214 = vector.shape_cast %213 : vector<16xf32> to vector<16x1xf32>
    %cst_81 = arith.constant 3.200000e+01 : f32
    %215 = vector.broadcast %cst_81 : f32 to vector<16x1xf32>
    %216 = arith.divf %214, %215 : vector<16x1xf32>
    %217 = vector.broadcast %216 : vector<16x1xf32> to vector<16x32xf32>
    %218 = arith.subf %212, %217 : vector<16x32xf32>
    %219 = arith.mulf %218, %218 : vector<16x32xf32>
    %cst_82 = arith.constant dense<0.000000e+00> : vector<16xf32>
    %220 = vector.multi_reduction <add>, %219, %cst_82 [1] : vector<16x32xf32> to vector<16xf32>
    %221 = vector.shape_cast %220 : vector<16xf32> to vector<16x1xf32>
    %cst_83 = arith.constant 3.200000e+01 : f32
    %222 = vector.broadcast %cst_83 : f32 to vector<16x1xf32>
    %223 = arith.divf %221, %222 : vector<16x1xf32>
    %224 = vector.broadcast %216 : vector<16x1xf32> to vector<16x32xf32>
    %225 = arith.subf %212, %224 : vector<16x32xf32>
    %cst_84 = arith.constant 9.99999974E-6 : f32
    %226 = vector.broadcast %cst_84 : f32 to vector<16x1xf32>
    %227 = arith.addf %223, %226 : vector<16x1xf32>
    %228 = math.rsqrt %227 : vector<16x1xf32>
    %229 = vector.broadcast %228 : vector<16x1xf32> to vector<16x32xf32>
    %230 = arith.mulf %225, %229 : vector<16x32xf32>
    %231 = vector.broadcast %8 : vector<1x32xf32> to vector<16x32xf32>
    %232 = arith.mulf %230, %231 : vector<16x32xf32>
    %233 = vector.broadcast %9 : vector<1x32xf32> to vector<16x32xf32>
    %234 = arith.addf %232, %233 : vector<16x32xf32>
    %c0_85 = arith.constant 0 : index
    %c0_86 = arith.constant 0 : index
    %235 = vector.load %arg7[%c0_85, %c0_86] : memref<16x32xf32, #tpu.memory_space<vmem>>, vector<16x32xf32>
    tpu.vector_store %arg7[%c0_85, %c0_86], %234 {strides = array<i32>} : memref<16x32xf32, #tpu.memory_space<vmem>>, vector<16x32xf32>,
    return
  }
  func.func @transform_0(%arg0: i32) -> (i32, i32) {
    %c0_i32 = arith.constant 0 : i32
    %c0_i32_0 = arith.constant 0 : i32
    %c0_i32_1 = arith.constant 0 : i32
    return %c0_i32, %c0_i32_0 : i32, i32
  }
  func.func @transform_1(%arg0: i32) -> (i32, i32) {
    %c0_i32 = arith.constant 0 : i32
    %c0_i32_0 = arith.constant 0 : i32
    %c0_i32_1 = arith.constant 0 : i32
    return %c0_i32, %c0_i32_0 : i32, i32
  }
  func.func @transform_2(%arg0: i32) -> (i32, i32) {
    %c0_i32 = arith.constant 0 : i32
    %c0_i32_0 = arith.constant 0 : i32
    %c0_i32_1 = arith.constant 0 : i32
    return %c0_i32, %c0_i32_0 : i32, i32
  }
  func.func @transform_3(%arg0: i32) -> (i32, i32) {
    %c0_i32 = arith.constant 0 : i32
    %c0_i32_0 = arith.constant 0 : i32
    %c0_i32_1 = arith.constant 0 : i32
    return %c0_i32, %c0_i32_0 : i32, i32
  }
  func.func @transform_4(%arg0: i32) -> (i32, i32) {
    %c0_i32 = arith.constant 0 : i32
    %c0_i32_0 = arith.constant 0 : i32
    %c0_i32_1 = arith.constant 0 : i32
    return %c0_i32, %c0_i32_0 : i32, i32
  }
  func.func @transform_5(%arg0: i32) -> (i32, i32) {
    %c0_i32 = arith.constant 0 : i32
    %c0_i32_0 = arith.constant 0 : i32
    %c0_i32_1 = arith.constant 0 : i32
    return %c0_i32, %c0_i32_0 : i32, i32
  }
  func.func @transform_6(%arg0: i32) -> (i32, i32) {
    %c0_i32 = arith.constant 0 : i32
    %c0_i32_0 = arith.constant 0 : i32
    %c0_i32_1 = arith.constant 0 : i32
    return %c0_i32, %c0_i32_0 : i32, i32
  }
}

</mosaic_0001>

<bundles_post_ra>
// kernel: tpu_custom_call.1
= control target key start
LH: loop header
LB: loop body
LE: loop exit
PB: predicated region body
PF: predicated region fallthrough
CT: control target
= control target key end

     0   :  { %11 = vsyncpa [#allocation3], 0  ;;  %s1500_s0 = inlined_call_operand.hbm [shape: f32[16,32], index: 0, kind: input, shape index: {}]   ;;  %s1501_s1 = inlined_call_operand.vmem [shape: f32[32,96], index: 1, kind: input, shape index: {}]   ;;  %s1502_s2 = inlined_call_operand.vmem [shape: f32[32,32], index: 2, kind: input, shape index: {}]   ;;  %s1503_s3 = inlined_call_operand.vmem [shape: f32[32,64], index: 3, kind: input, shape index: {}]   ;;  %s1504_s4 = inlined_call_operand.vmem [shape: f32[64,32], index: 4, kind: input, shape index: {}]   ;;  %s1505_s5 = inlined_call_operand.hbm [shape: f32[8,96], index: 5, kind: input, shape index: {}]   ;;  %s1506_s6 = inlined_call_operand.hbm [shape: f32[16,32], index: 6, kind: output, shape index: {}]  }
   0x1   :  { %12 = vsyncpa [#allocation6], 0 }
   0x2   :  { %13 = vsyncpa [#allocation4], 0  ;;  %s18_s23 = sshll.u32 %s1500_s0, 4  ;;  %s1201_s24 = smov [#allocation2]   ;;  %s19_s23 = int_to_ptr.hbm [resolvable:$true] %s18_s23 }
   0x3   :  { %s20_s25 = sshll.u32 %s1201_s24, 4  ;;  %s40_s28 = sshll.u32 %s1505_s5, 4  ;;  %s21_s25 = int_to_ptr.vmem [resolvable:$true] %s20_s25  ;;  %s41_s28 = int_to_ptr.hbm [resolvable:$true] %s40_s28 }
   0x4   :  { %s1202_s29 = smov 128   ;;  %s1203_s30 = smov 8  }
   0x5   :  { %26 = dma.hbm_to_vmem [thread:$0]  %s19_s23, 256, %s21_s25, [#allocation3], %s1202_s29, %s1202_s29, %s1203_s30  }
   0x6   :  { %s1204_s7 = smov [#allocation5]  }
   0x7   :  { %s42_s8 = sshll.u32 %s1204_s7, 4  ;;  %s43_s8 = int_to_ptr.vmem [resolvable:$true] %s42_s8 }
   0x8   :  { %45 = dma.hbm_to_vmem [thread:$0]  %s41_s28, 128, %s43_s8, [#allocation6]  }
   0x9   :  { %1195 = dma.done.wait [#allocation3], 256  }
   0xa   :  { %1196 = vsyncadd [#allocation3], 4294967040 }
   0xb   :  { %1197 = dma.done.wait [#allocation6], 128  }
   0xc   :  { %1198 = vsyncadd [#allocation6], 4294967168  ;;  %v60_v0 = vld [vmem:[%s1501_s1 + $0x18] sm:$0xff]  ;;  %v59_v1 = vld [vmem:[%s1501_s1 + $0x10] sm:$0xff]  ;;  %vm62_vm0 = vcmask 261120   ;;  %s1205_s15 = smov 120  }
   0xd   :  { %81 = vmatpush.msra.mxu0 %v60_v0  ;;  %1060 = vmatpush.msra.mxu2 %v60_v0  ;;  %v58_v2 = vld [vmem:[%s1501_s1 + $0x8] sm:$0xff]  ;;  %v57_v3 = vld [vmem:[%s1501_s1] sm:$0xff]  ;;  %v1278_v5 = vld [vmem:[#allocation5] sm:$0xff]  ;;  %s1206_s1 = smov 96   ;;  %s1207_s16 = smov 88   ;;  %vm95_vm1 = vcmask 64512  }
   0xe   :  { %v1274_v4 = vld [vmem:[#allocation2] sm:$0xff]  ;;  %v61_v6 = vperm.slane %v1278_v5, 0  ;;  %v1288_v9 = vld [vmem:[#allocation2 + $0x8] sm:$0xff]  ;;  %s1208_s17 = smov 112   ;;  %s1209_s18 = smov 72   ;;  %v338_v45 = vld [vmem:[%s1502_s2 + $0x10] sm:$0xff] }
   0xf   :  { %82 = vmatpush.msra.mxu0 %v59_v1  ;;  %1061 = vmatpush.msra.mxu2 %v59_v1  ;;  %s1210_s19 = smov 64   ;;  %s1211_s20 = smov 56   ;;  %v158_v41 = vld [vmem:[%s1502_s2] sm:$0xff]  ;;  %v225_v42 = vld [vmem:[%s1502_s2 + $0x8] sm:$0xff]  ;;  %vm918_vm6 = vcmask 523264  }
  0x10   :  { %s1212_s21 = smov 80   ;;  %s1213_s28 = smov 48  }
  0x11   :  { %83 = vmatpush.msra.mxu0 %v58_v2  ;;  %1062 = vmatpush.msra.mxu2 %v58_v2  ;;  %s1214_s7 = smov 104   ;;  %s1215_s8 = smov 40  }
  0x13   :  { %84 = vmatpush.msra.mxu0 %v57_v3  ;;  %1063 = vmatpush.msra.mxu2 %v57_v3 }
  0x14   :  { %1022 = vmatmul.msk.f32.vlgmr.msra.gmra.mxu0 %vm62_vm0, %v1274_v4  ;;  %1023 = vmatmul.msk.f32.vlgmr.msra.gmra.mxu2 %vm62_vm0, %v1288_v9 }
  0x91   :  { %v86_v7 = vpop.f32.mrf.mxu0 }
  0x92   :  { %v1281_v8 = vadd.f32 %v86_v7, %v61_v6 }
  0x94   :  { %159 = vrot.lane.b32.xlu1 %v1281_v8, %s1205_s15  ;;  %93 = vrot.lane.b32.xlu0 %v1281_v8, %s1206_s1 }
  0x97   :  { %v89_v19 = vpop.f32.mrf.mxu2 }
  0x98   :  { %v1301_v20 = vadd.f32 %v89_v19, %v61_v6 }
  0x9c   :  { %161 = vrot.lane.b32.xlu0 %v1281_v8, %s1207_s16 }
 0x106   :  { %v94_v10 = vpop.permute.xlu0 %93  ;;  %v160_v12 = vpop.permute.xlu1 %159 }
 0x107   :  { %1024 = vmatpush.xpose.msk.msra.mxu1 %vm95_vm1, %v94_v10 }
 0x10a   :  { %1025 = vmatmul.msk.f32.vlgmr.msra.gmra.mxu1 %vm95_vm1, %v1281_v8 }
 0x10b   :  { %244 = vmatpush.msrb.mxu1 %v225_v42 }
 0x10e   :  { %v162_v11 = vpop.permute.xlu0 %161 }
 0x10f   :  { %1027 = vmatpush.xpose.msk.msra.mxu3 %vm95_vm1, %v162_v11 }
 0x112   :  { %1028 = vmatmul.msk.f32.vlgmr.msra.gmra.mxu3 %vm95_vm1, %v160_v12 }
 0x113   :  { %267 = vmatpush.msrb.mxu3 %v158_v41 }
 0x115   :  { %357 = vmatpush.msra.mxu3 %v338_v45 }
 0x187   :  { %v117_v13 = vpop.f32.mrf.mxu1 }
 0x188   :  { %v120_v14 = vmul.f32 0.35355338, %v117_v13 }
 0x18a   :  { %v121_v15 = vsel %vm95_vm1, %v120_v14, -inf }
 0x18b   :  { %122 = vmax.xlane.f32.xlu1 %v121_v15 }
 0x195   :  { %v184_v16 = vpop.f32.mrf.mxu3 }
 0x196   :  { %v187_v17 = vmul.f32 0.35355338, %v184_v16 }
 0x198   :  { %v188_v18 = vsel %vm95_vm1, %v187_v17, -inf }
 0x199   :  { %189 = vmax.xlane.f32.xlu2 %v188_v18 }
 0x1a4   :  { %272 = vrot.lane.b32.xlu1 %v1281_v8, %s1208_s17 }
 0x1ac   :  { %455 = vrot.lane.b32.xlu1 %v1301_v20, %s1206_s1 }
 0x1b4   :  { %365 = vrot.lane.b32.xlu1 %v1281_v8, %s1209_s18 }
 0x1fe   :  { %v123_v21 = vpop.xlane.xlu1 %122 }
 0x1ff   :  { %v124_v22 = vsub.f32 %v120_v14, %v123_v21 }
 0x201   :  { %v125_v23 = vmul.f32 1.442695, %v124_v22 }
 0x203   :  { %1081 = vpow2.f32 %v125_v23 }
 0x209   :  { %v1082_v24 = vpop.eup %1081 }
 0x20a   :  { %v127_v25 = vsel %vm95_vm1, %v1082_v24, 0.0 }
 0x20b   :  { %128 = vadd.xlane.f32.xlu2 %v127_v25 }
 0x20c   :  { %v190_v26 = vpop.xlane.xlu2 %189 }
 0x20d   :  { %v191_v27 = vsub.f32 %v187_v17, %v190_v26 }
 0x20f   :  { %v192_v28 = vmul.f32 1.442695, %v191_v27 }
 0x211   :  { %1083 = vpow2.f32 %v192_v28 }
 0x216   :  { %v273_v40 = vpop.permute.xlu1 %272 }
 0x217   :  { %v1084_v29 = vpop.eup %1083 }
 0x218   :  { %v194_v30 = vsel %vm95_vm1, %v1084_v29, 0.0 }
 0x219   :  { %195 = vadd.xlane.f32.xlu0 %v194_v30 }
 0x21e   :  { %v456_v46 = vpop.permute.xlu1 %455 }
 0x223   :  { %132 = vrot.lane.b32.xlu2 %v1281_v8, %s1210_s19 }
 0x226   :  { %v366_v60 = vpop.permute.xlu1 %365 }
 0x22b   :  { %199 = vrot.lane.b32.xlu2 %v1281_v8, %s1211_s20 }
 0x233   :  { %274 = vrot.lane.b32.xlu2 %v1281_v8, %s1212_s21 }
 0x27e   :  { %v129_v31 = vpop.xlane.xlu2 %128 }
 0x27f   :  { %1085 = vrcp.f32 %v129_v31 }
 0x285   :  { %v1086_v32 = vpop.eup %1085 }
 0x286   :  { %v133_v33 = vpop.permute.xlu2 %132  ;;  %v131_v34 = vmul.f32 %v1086_v32, %v1082_v24 }
 0x287   :  { %153 = vmatpush.msrb.mxu2 %v133_v33 }
 0x288   :  { %1026 = vmatmul.msk.f32.vlgmr.msrb.gmra.mxu2 %vm95_vm1, %v131_v34  ;;  %v1378_v34 = vld [vmem:[%s1502_s2 + $0x18] sm:$0xff]  ;;  %s1008_s2 = sshll.u32 %s1506_s6, 4  ;;  %s1009_s2 = int_to_ptr.hbm [resolvable:$true] %s1008_s2 }
 0x28c   :  { %v196_v35 = vpop.xlane.xlu0 %195 }
 0x28d   :  { %1087 = vrcp.f32 %v196_v35 }
 0x28e   :  { %v200_v36 = vpop.permute.xlu2 %199 }
 0x28f   :  { %220 = vmatpush.msra.mxu2 %v200_v36 }
 0x293   :  { %v1088_v37 = vpop.eup %1087 }
 0x294   :  { %v198_v38 = vmul.f32 %v1088_v37, %v1084_v29 }
 0x296   :  { %1029 = vmatmul.msk.f32.vlgmr.msra.gmra.mxu2 %vm95_vm1, %v198_v38  ;;  %v275_v39 = vpop.permute.xlu2 %274 }
 0x297   :  { %1032 = vmatpush.xpose.msk.msrb.mxu2 %vm95_vm1, %v275_v39 }
 0x29e   :  { %1033 = vmatmul.msk.f32.vlgmr.msrb.gmra.mxu2 %vm95_vm1, %v273_v40 }
 0x30b   :  { %v155_v43 = vpop.f32.mrf.mxu2 }
 0x30c   :  { %1031 = vmatmul.msk.f32.vlgmr.msrb.gmra.mxu3 %vm95_vm1, %v155_v43 }
 0x30d   :  { %1040 = vmatpush.xpose.msk.msrb.mxu3 %vm95_vm1, %v456_v46 }
 0x319   :  { %v222_v44 = vpop.f32.mrf.mxu2 }
 0x31a   :  { %1030 = vmatmul.msk.f32.vlgmr.msrb.gmra.mxu1 %vm95_vm1, %v222_v44 }
 0x321   :  { %v297_v47 = vpop.f32.mrf.mxu2 }
 0x322   :  { %v300_v48 = vmul.f32 0.35355338, %v297_v47 }
 0x324   :  { %v301_v49 = vsel %vm95_vm1, %v300_v48, -inf }
 0x325   :  { %302 = vmax.xlane.f32.xlu2 %v301_v49 }
 0x33d   :  { %493 = vrot.lane.b32.xlu2 %v1301_v20, %s1210_s19 }
 0x38f   :  { %v1349_v3 = vpop.f32.mrf.mxu3 }
 0x397   :  { %v1341_v62 = vpop.f32.mrf.mxu1 }
 0x398   :  { %v303_v50 = vpop.xlane.xlu2 %302 }
 0x399   :  { %v304_v51 = vsub.f32 %v300_v48, %v303_v50 }
 0x39b   :  { %v305_v52 = vmul.f32 1.442695, %v304_v51 }
 0x39d   :  { %1089 = vpow2.f32 %v305_v52 }
 0x3a0   :  { %v494_v53 = vpop.permute.xlu2 %493 }
 0x3a1   :  { %514 = vmatpush.msrb.mxu0 %v494_v53 }
 0x3a3   :  { %626 = vmatpush.msra.mxu0 %v158_v41  ;;  %v1090_v54 = vpop.eup %1089 }
 0x3a4   :  { %v307_v55 = vsel %vm95_vm1, %v1090_v54, 0.0 }
 0x3a5   :  { %308 = vadd.xlane.f32.xlu0 %v307_v55 }
 0x3b9   :  { %312 = vrot.lane.b32.xlu0 %v1281_v8, %s1213_s28 }
 0x3c1   :  { %363 = vrot.lane.b32.xlu0 %v1281_v8, %s1214_s7 }
 0x418   :  { %v309_v56 = vpop.xlane.xlu0 %308 }
 0x419   :  { %1091 = vrcp.f32 %v309_v56 }
 0x41f   :  { %v1092_v57 = vpop.eup %1091 }
 0x420   :  { %v311_v58 = vmul.f32 %v1092_v57, %v1090_v54 }
 0x42b   :  { %v313_v59 = vpop.permute.xlu0 %312 }
 0x42c   :  { %333 = vmatpush.msra.mxu1 %v313_v59 }
 0x42d   :  { %1034 = vmatmul.msk.f32.vlgmr.msra.gmra.mxu1 %vm95_vm1, %v311_v58  ;;  %v270_v58 = vadd.f32 %v1349_v3, %v1341_v62 }
 0x42e   :  { %1036 = vmatpush.xpose.msk.msrb.mxu1 %vm95_vm1, %v366_v60 }
 0x432   :  { %448 = vmatpush.msra.mxu1 %v1378_v34 }
 0x433   :  { %v364_v61 = vpop.permute.xlu0 %363 }
 0x435   :  { %1037 = vmatmul.msk.f32.vlgmr.msrb.gmra.mxu1 %vm95_vm1, %v364_v61 }
 0x4aa   :  { %v335_v63 = vpop.f32.mrf.mxu1 }
 0x4ab   :  { %1035 = vmatmul.msk.f32.vlgmr.msra.gmra.mxu3 %vm95_vm1, %v335_v63  ;;  %v811_v63 = vperm.slane %v1278_v5, 1 }
 0x4ac   :  { %603 = vmatpush.msra.mxu3 %v225_v42 }
 0x4b2   :  { %v388_v0 = vpop.f32.mrf.mxu1 }
 0x4b3   :  { %v391_v1 = vmul.f32 0.35355338, %v388_v0  ;;  %1041 = vmatmul.msk.f32.vlgmr.msrb.gmra.mxu3 %vm95_vm1, %v1301_v20 }
 0x4b4   :  { %715 = vmatpush.msrb.mxu3 %v338_v45 }
 0x4b5   :  { %v392_v2 = vsel %vm95_vm1, %v391_v1, -inf }
 0x4b6   :  { %393 = vmax.xlane.f32.xlu2 %v392_v2 }
 0x4ce   :  { %633 = vrot.lane.b32.xlu2 %v1301_v20, %s1212_s21 }
 0x529   :  { %v394_v6 = vpop.xlane.xlu2 %393 }
 0x52a   :  { %v395_v10 = vsub.f32 %v391_v1, %v394_v6 }
 0x52c   :  { %v396_v11 = vmul.f32 1.442695, %v395_v10 }
 0x52e   :  { %v1351_v7 = vpop.f32.mrf.mxu3  ;;  %1093 = vpow2.f32 %v396_v11 }
 0x52f   :  { %v362_v60 = vadd.f32 %v1351_v7, %v270_v58  ;;  %v914_v58 = vld [vmem:[%s1504_s4 + $0x28] sm:$0xff] }
 0x531   :  { %v634_v31 = vpop.permute.xlu2 %633 }
 0x534   :  { %v1094_v15 = vpop.eup %1093 }
 0x535   :  { %v398_v16 = vsel %vm95_vm1, %v1094_v15, 0.0 }
 0x536   :  { %v478_v12 = vpop.f32.mrf.mxu3 }
 0x537   :  { %v481_v13 = vmul.f32 0.35355338, %v478_v12 }
 0x539   :  { %v482_v14 = vsel %vm95_vm1, %v481_v13, -inf }
 0x53a   :  { %483 = vmax.xlane.f32.xlu1 %v482_v14 }
 0x542   :  { %399 = vadd.xlane.f32.xlu1 %v398_v16 }
 0x55b   :  { %521 = vrot.lane.b32.xlu1 %v1301_v20, %s1207_s16 }
 0x563   :  { %723 = vrot.lane.b32.xlu1 %v1301_v20, %s1209_s18 }
 0x5ad   :  { %v484_v17 = vpop.xlane.xlu1 %483 }
 0x5ae   :  { %v485_v18 = vsub.f32 %v481_v13, %v484_v17 }
 0x5b0   :  { %v486_v19 = vmul.f32 1.442695, %v485_v18  ;;  %v1216_v18 = vmov 32.0  }
 0x5b2   :  { %1095 = vpow2.f32 %v486_v19 }
 0x5b5   :  { %v400_v23 = vpop.xlane.xlu1 %399 }
 0x5b8   :  { %v1096_v21 = vpop.eup %1095 }
 0x5b9   :  { %v488_v22 = vsel %vm95_vm1, %v1096_v21, 0.0 }
 0x5ba   :  { %489 = vadd.xlane.f32.xlu0 %v488_v22 }
 0x5cd   :  { %v522_v24 = vpop.permute.xlu1 %521 }
 0x5ce   :  { %403 = vrot.lane.b32.xlu0 %v1281_v8, %s1215_s8 }
 0x5d5   :  { %v724_v28 = vpop.permute.xlu1 %723 }
 0x5d6   :  { %519 = vrot.lane.b32.xlu0 %v1301_v20, %s1205_s15 }
 0x5de   :  { %631 = vrot.lane.b32.xlu0 %v1301_v20, %s1208_s17 }
 0x5e6   :  { %721 = vrot.lane.b32.xlu0 %v1301_v20, %s1214_s7 }
 0x62d   :  { %v490_v25 = vpop.xlane.xlu0 %489 }
 0x62e   :  { %1097 = vrcp.f32 %v490_v25 }
 0x62f   :  { %1099 = vrcp.f32 %v400_v23 }
 0x634   :  { %v1098_v26 = vpop.eup %1097 }
 0x635   :  { %v492_v27 = vmul.f32 %v1098_v26, %v1096_v21  ;;  %v1100_v8 = vpop.eup %1099 }
 0x636   :  { %v402_v29 = vmul.f32 %v1100_v8, %v1094_v15 }
 0x637   :  { %1042 = vmatmul.msk.f32.vlgmr.msrb.gmra.mxu0 %vm95_vm1, %v492_v27 }
 0x638   :  { %1052 = vmatpush.xpose.msk.msrb.mxu0 %vm95_vm1, %v724_v28 }
 0x640   :  { %v404_v30 = vpop.permute.xlu0 %403 }
 0x641   :  { %424 = vmatpush.msra.mxu2 %v404_v30 }
 0x642   :  { %1038 = vmatmul.msk.f32.vlgmr.msra.gmra.mxu2 %vm95_vm1, %v402_v29 }
 0x643   :  { %1043 = vmatpush.xpose.msk.msrb.mxu2 %vm95_vm1, %v522_v24 }
 0x647   :  { %1048 = vmatpush.xpose.msk.msra.mxu2 %vm95_vm1, %v634_v31 }
 0x648   :  { %v520_v32 = vpop.permute.xlu0 %519 }
 0x64a   :  { %1044 = vmatmul.msk.f32.vlgmr.msrb.gmra.mxu2 %vm95_vm1, %v520_v32 }
 0x650   :  { %v632_v33 = vpop.permute.xlu0 %631 }
 0x652   :  { %1049 = vmatmul.msk.f32.vlgmr.msra.gmra.mxu2 %vm95_vm1, %v632_v33 }
 0x658   :  { %v722_v36 = vpop.permute.xlu0 %721 }
 0x6b4   :  { %v516_v35 = vpop.f32.mrf.mxu0 }
 0x6b5   :  { %1047 = vmatmul.msk.f32.vlgmr.msra.gmra.mxu0 %vm95_vm1, %v516_v35  ;;  %v876_v35 = vld [vmem:[%s1503_s3 + $0x18] sm:$0xff] }
 0x6bd   :  { %1053 = vmatmul.msk.f32.vlgmr.msrb.gmra.mxu0 %vm95_vm1, %v722_v36  ;;  %v875_v36 = vld [vmem:[%s1503_s3 + $0x10] sm:$0xff] }
 0x6c5   :  { %v426_v37 = vpop.f32.mrf.mxu2 }
 0x6c6   :  { %1039 = vmatmul.msk.f32.vlgmr.msra.gmra.mxu1 %vm95_vm1, %v426_v37  ;;  %v874_v37 = vld [vmem:[%s1503_s3 + $0x8] sm:$0xff] }
 0x6cd   :  { %v544_v38 = vpop.f32.mrf.mxu2 }
 0x6ce   :  { %v547_v39 = vmul.f32 0.35355338, %v544_v38  ;;  %v873_v38 = vld [vmem:[%s1503_s3] sm:$0xff] }
 0x6d0   :  { %v548_v40 = vsel %vm95_vm1, %v547_v39, -inf }
 0x6d1   :  { %549 = vmax.xlane.f32.xlu1 %v548_v40 }
 0x6d5   :  { %v656_v41 = vpop.f32.mrf.mxu2 }
 0x6d6   :  { %v659_v42 = vmul.f32 0.35355338, %v656_v41 }
 0x6d8   :  { %v660_v43 = vsel %vm95_vm1, %v659_v42, -inf }
 0x6d9   :  { %661 = vmax.xlane.f32.xlu0 %v660_v43 }
 0x732   :  { %v1386_v44 = vpop.f32.mrf.mxu0 }
 0x73a   :  { %v746_v45 = vpop.f32.mrf.mxu0 }
 0x73b   :  { %v749_v46 = vmul.f32 0.35355338, %v746_v45 }
 0x73d   :  { %v750_v47 = vsel %vm95_vm1, %v749_v46, -inf }
 0x73e   :  { %751 = vmax.xlane.f32.xlu2 %v750_v47 }
 0x743   :  { %v450_v59 = vpop.f32.mrf.mxu1 }
 0x744   :  { %v550_v48 = vpop.xlane.xlu1 %549  ;;  %v453_v61 = vadd.f32 %v450_v59, %v362_v60  ;;  %v913_v59 = vld [vmem:[%s1504_s4 + $0x20] sm:$0xff]  ;;  %v912_v60 = vld [vmem:[%s1504_s4 + $0x18] sm:$0xff] }
 0x745   :  { %v551_v49 = vsub.f32 %v547_v39, %v550_v48 }
 0x746   :  { %v812_v0 = vadd.f32 %v811_v63, %v453_v61  ;;  %v911_v61 = vld [vmem:[%s1504_s4 + $0x10] sm:$0xff] }
 0x747   :  { %v552_v50 = vmul.f32 1.442695, %v551_v49  ;;  %v867_v49 = vperm.slane %v1278_v5, 4 }
 0x748   :  { %v814_v1 = vadd.f32 %v812_v0, %v1274_v4  ;;  %v910_v0 = vld [vmem:[%s1504_s4 + $0x8] sm:$0xff] }
 0x749   :  { %1101 = vpow2.f32 %v552_v50 }
 0x74a   :  { %v816_v2 = vsel %vm62_vm0, %v814_v1, 0.0 }
 0x74c   :  { %v662_v51 = vpop.xlane.xlu0 %661 }
 0x74d   :  { %v663_v52 = vsub.f32 %v659_v42, %v662_v51 }
 0x74f   :  { %v1102_v53 = vpop.eup %1101  ;;  %v664_v54 = vmul.f32 1.442695, %v663_v52  ;;  %v870_v52 = vperm.slane %v1278_v5, 5 }
 0x750   :  { %v554_v55 = vsel %vm95_vm1, %v1102_v53, 0.0 }
 0x751   :  { %1103 = vpow2.f32 %v664_v54  ;;  %555 = vadd.xlane.f32.xlu1 %v554_v55 }
 0x757   :  { %v1104_v56 = vpop.eup %1103 }
 0x758   :  { %v666_v57 = vsel %vm95_vm1, %v1104_v56, 0.0 }
 0x759   :  { %667 = vadd.xlane.f32.xlu0 %v666_v57  ;;  %v915_v57 = vld [vmem:[%s1504_s4 + $0x30] sm:$0xff] }
 0x76a   :  { %559 = vrot.lane.b32.xlu1 %v1301_v20, %s1211_s20 }
 0x76d   :  { %671 = vrot.lane.b32.xlu0 %v1301_v20, %s1213_s28 }
 0x794   :  { %817 = vadd.xlane.f32.xlu1 %v816_v2 }
 0x7b1   :  { %v752_v6 = vpop.xlane.xlu2 %751 }
 0x7b2   :  { %v753_v10 = vsub.f32 %v749_v46, %v752_v6 }
 0x7b4   :  { %v754_v11 = vmul.f32 1.442695, %v753_v10  ;;  %v877_v10 = vperm.slane %v1278_v5, 2 }
 0x7b6   :  { %1105 = vpow2.f32 %v754_v11 }
 0x7bc   :  { %v1106_v12 = vpop.eup %1105 }
 0x7bd   :  { %v756_v62 = vsel %vm95_vm1, %v1106_v12, 0.0 }
 0x7be   :  { %757 = vadd.xlane.f32.xlu2 %v756_v62 }
 0x7c4   :  { %v556_v3 = vpop.xlane.xlu1 %555 }
 0x7c5   :  { %1107 = vrcp.f32 %v556_v3 }
 0x7cb   :  { %v1108_v13 = vpop.eup %1107 }
 0x7cc   :  { %v668_v7 = vpop.xlane.xlu0 %667  ;;  %v558_v4 = vmul.f32 %v1108_v13, %v1102_v53 }
 0x7cd   :  { %1109 = vrcp.f32 %v668_v7 }
 0x7ce   :  { %1111 = vrcp.f32 %v1216_v18 }
 0x7d3   :  { %v1110_v16 = vpop.eup %1109 }
 0x7d4   :  { %v670_v17 = vmul.f32 %v1110_v16, %v1104_v56  ;;  %v1112_v19 = vpop.eup %1111  ;;  %v916_v56 = vld [vmem:[%s1504_s4 + $0x38] sm:$0xff] }
 0x7d5   :  { %vm827_vm2 = vweird.f32 %v1112_v19  ;;  %933 = vmatpush.msra.mxu0 %v916_v56 }
 0x7d6   :  { %761 = vrot.lane.b32.xlu2 %v1301_v20, %s1215_s8  ;;  %v823_v20 = vmul.f32 32.0, %v1112_v19 }
 0x7d7   :  { %934 = vmatpush.msra.mxu0 %v915_v57 }
 0x7d8   :  { %v824_v21 = vsub.f32 1.0, %v823_v20 }
 0x7d9   :  { %935 = vmatpush.msra.mxu0 %v914_v58 }
 0x7da   :  { %v825_v22 = vmul.f32 %v1112_v19, %v824_v21 }
 0x7db   :  { %936 = vmatpush.msra.mxu0 %v913_v59 }
 0x7dc   :  { %v560_v14 = vpop.permute.xlu1 %559  ;;  %v826_v23 = vadd.f32 %v1112_v19, %v825_v22 }
 0x7dd   :  { %580 = vmatpush.msrb.mxu1 %v560_v14  ;;  %937 = vmatpush.msra.mxu0 %v912_v60 }
 0x7de   :  { %1045 = vmatmul.msk.f32.vlgmr.msrb.gmra.mxu1 %vm95_vm1, %v558_v4  ;;  %v1409_v24 = vsel %vm827_vm2, %v1112_v19, %v826_v23 }
 0x7df   :  { %v672_v15 = vpop.permute.xlu0 %671  ;;  %938 = vmatpush.msra.mxu0 %v911_v61 }
 0x7e0   :  { %692 = vmatpush.msra.mxu1 %v672_v15 }
 0x7e1   :  { %939 = vmatpush.msra.mxu0 %v910_v0 }
 0x7e2   :  { %805 = vmatpush.msrb.mxu1 %v1378_v34 }
 0x7e6   :  { %1050 = vmatmul.msk.f32.vlgmr.msra.gmra.mxu1 %vm95_vm1, %v670_v17  ;;  %v917_v17 = vperm.slane %v1278_v5, 3 }
 0x807   :  { %v818_v25 = vpop.xlane.xlu1 %817 }
 0x808   :  { %v829_v26 = vmul.f32 %v1409_v24, %v818_v25 }
 0x80a   :  { %v831_v27 = vsub.f32 %v814_v1, %v829_v26  ;;  %v909_v1 = vld [vmem:[%s1504_s4] sm:$0xff]  ;;  %s1217_s4 = smov [#allocation7]  }
 0x80b   :  { %940 = vmatpush.msra.mxu0 %v909_v1  ;;  %s1006_s8 = sshll.u32 %s1217_s4, 4  ;;  %s1007_s8 = int_to_ptr.vmem [resolvable:$true] %s1006_s8 }
 0x80c   :  { %v833_v28 = vmul.f32 %v831_v27, %v831_v27 }
 0x80e   :  { %v835_v8 = vsel %vm62_vm0, %v833_v28, 0.0 }
 0x80f   :  { %836 = vadd.xlane.f32.xlu2 %v835_v8 }
 0x831   :  { %v758_v29 = vpop.xlane.xlu2 %757 }
 0x832   :  { %1113 = vrcp.f32 %v758_v29 }
 0x838   :  { %v1114_v30 = vpop.eup %1113 }
 0x839   :  { %v760_v31 = vmul.f32 %v1114_v30, %v1106_v12  ;;  %v762_v32 = vpop.permute.xlu2 %761 }
 0x83a   :  { %782 = vmatpush.msrb.mxu2 %v762_v32 }
 0x83b   :  { %1054 = vmatmul.msk.f32.vlgmr.msrb.gmra.mxu2 %vm95_vm1, %v760_v31 }
 0x85b   :  { %v582_v33 = vpop.f32.mrf.mxu1 }
 0x85c   :  { %1046 = vmatmul.msk.f32.vlgmr.msra.gmra.mxu3 %vm95_vm1, %v582_v33 }
 0x85d   :  { %896 = vmatpush.msra.mxu3 %v876_v35 }
 0x85f   :  { %897 = vmatpush.msra.mxu3 %v875_v36 }
 0x861   :  { %898 = vmatpush.msra.mxu3 %v874_v37 }
 0x863   :  { %v694_v34 = vpop.f32.mrf.mxu1  ;;  %899 = vmatpush.msra.mxu3 %v873_v38 }
 0x864   :  { %1051 = vmatmul.msk.f32.vlgmr.msrb.gmra.mxu3 %vm95_vm1, %v694_v34 }
 0x882   :  { %v837_v39 = vpop.xlane.xlu2 %836 }
 0x883   :  { %v841_v40 = vmul.f32 %v837_v39, %v1409_v24 }
 0x885   :  { %v843_v41 = vadd.f32 1e-05, %v841_v40 }
 0x887   :  { %1115 = vrsqrt.f32 %v843_v41  ;;  %vm851_vm4 = vweird.f32 %v843_v41 }
 0x88d   :  { %v1116_v42 = vpop.eup %1115 }
 0x88e   :  { %v846_v43 = vmul.f32 %v1116_v42, %v843_v41  ;;  %vm852_vm3 = vweird.f32 %v1116_v42 }
 0x88f   :  { %vm853_vm5 = vmor %vm851_vm4, %vm852_vm3 }
 0x890   :  { %v847_v45 = vmul.f32 %v1116_v42, %v846_v43 }
 0x892   :  { %v848_v46 = vmul.f32 0.5, %v847_v45 }
 0x894   :  { %v849_v47 = vsub.f32 1.5, %v848_v46 }
 0x896   :  { %v850_v48 = vmul.f32 %v1116_v42, %v849_v47 }
 0x898   :  { %v854_v50 = vsel %vm853_vm5, %v1116_v42, %v850_v48 }
 0x899   :  { %v865_v51 = vmul.f32 %v854_v50, %v831_v27 }
 0x89b   :  { %v868_v53 = vmul.f32 %v867_v49, %v865_v51 }
 0x89d   :  { %v871_v54 = vadd.f32 %v870_v52, %v868_v53 }
 0x89f   :  { %1056 = vmatmul.msk.f32.vlgmr.msra.gmra.mxu3 %vm62_vm0, %v871_v54 }
 0x8be   :  { %v784_v55 = vpop.f32.mrf.mxu2 }
 0x8bf   :  { %1055 = vmatmul.msk.f32.vlgmr.msrb.gmra.mxu1 %vm95_vm1, %v784_v55  ;;  %v997_v55 = vperm.slane %v1278_v5, 7 }
 0x8df   :  { %v605_v2 = vpop.f32.mrf.mxu3 }
 0x8e0   :  { %v629_v3 = vadd.f32 %v1386_v44, %v605_v2 }
 0x8e7   :  { %v717_v6 = vpop.f32.mrf.mxu3 }
 0x8e8   :  { %v720_v7 = vadd.f32 %v717_v6, %v629_v3 }
 0x922   :  { %v901_v11 = vpop.f32.mrf.mxu3 }
 0x923   :  { %v902_v12 = vadd.f32 %v901_v11, %v877_v10 }
 0x925   :  { %v907_v62 = vmax.f32 %v902_v12, 0.0 }
 0x927   :  { %1058 = vmatmul.msk.f32.vlgmr.msra.gmra.mxu0 %vm918_vm6, %v907_v62 }
 0x93c   :  { %v807_v13 = vpop.f32.mrf.mxu1 }
 0x93d   :  { %v810_v4 = vadd.f32 %v807_v13, %v720_v7 }
 0x93f   :  { %v813_v14 = vadd.f32 %v811_v63, %v810_v4 }
 0x941   :  { %v815_v15 = vadd.f32 %v813_v14, %v1288_v9 }
 0x943   :  { %v819_v16 = vsel %vm62_vm0, %v815_v15, 0.0 }
 0x944   :  { %820 = vadd.xlane.f32.xlu0 %v819_v16 }
 0x9a4   :  { %v942_v18 = vpop.f32.mrf.mxu0 }
 0x9a5   :  { %v943_v19 = vadd.f32 %v942_v18, %v917_v17 }
 0x9a7   :  { %v948_v20 = vadd.f32 %v943_v19, %v871_v54 }
 0x9a9   :  { %v950_v21 = vsel %vm62_vm0, %v948_v20, 0.0 }
 0x9aa   :  { %951 = vadd.xlane.f32.xlu0 %v950_v21 }
 0x9b7   :  { %v821_v44 = vpop.xlane.xlu0 %820 }
 0x9b8   :  { %v830_v22 = vmul.f32 %v1409_v24, %v821_v44 }
 0x9ba   :  { %v832_v23 = vsub.f32 %v815_v15, %v830_v22 }
 0x9bc   :  { %v834_v25 = vmul.f32 %v832_v23, %v832_v23 }
 0x9be   :  { %v838_v63 = vsel %vm62_vm0, %v834_v25, 0.0 }
 0x9bf   :  { %839 = vadd.xlane.f32.xlu1 %v838_v63 }
 0xa1d   :  { %v952_v9 = vpop.xlane.xlu0 %951 }
 0xa1e   :  { %v956_v26 = vmul.f32 %v952_v9, %v1409_v24 }
 0xa20   :  { %v958_v27 = vsub.f32 %v948_v20, %v956_v26 }
 0xa22   :  { %v960_v28 = vmul.f32 %v958_v27, %v958_v27 }
 0xa24   :  { %v962_v8 = vsel %vm62_vm0, %v960_v28, 0.0 }
 0xa25   :  { %963 = vadd.xlane.f32.xlu0 %v962_v8 }
 0xa32   :  { %v840_v29 = vpop.xlane.xlu1 %839 }
 0xa33   :  { %v842_v30 = vmul.f32 %v840_v29, %v1409_v24 }
 0xa35   :  { %v844_v31 = vadd.f32 1e-05, %v842_v30 }
 0xa37   :  { %1117 = vrsqrt.f32 %v844_v31  ;;  %vm861_vm8 = vweird.f32 %v844_v31 }
 0xa3d   :  { %v1118_v32 = vpop.eup %1117 }
 0xa3e   :  { %v856_v33 = vmul.f32 %v1118_v32, %v844_v31  ;;  %vm862_vm7 = vweird.f32 %v1118_v32 }
 0xa3f   :  { %vm863_vm9 = vmor %vm861_vm8, %vm862_vm7 }
 0xa40   :  { %v857_v34 = vmul.f32 %v1118_v32, %v856_v33 }
 0xa42   :  { %v858_v35 = vmul.f32 0.5, %v857_v34 }
 0xa44   :  { %v859_v36 = vsub.f32 1.5, %v858_v35 }
 0xa46   :  { %v860_v37 = vmul.f32 %v1118_v32, %v859_v36 }
 0xa48   :  { %v864_v38 = vsel %vm863_vm9, %v1118_v32, %v860_v37 }
 0xa49   :  { %v866_v39 = vmul.f32 %v864_v38, %v832_v23 }
 0xa4b   :  { %v869_v40 = vmul.f32 %v867_v49, %v866_v39  ;;  %v994_v49 = vperm.slane %v1278_v5, 6 }
 0xa4d   :  { %v872_v41 = vadd.f32 %v870_v52, %v869_v40 }
 0xa4f   :  { %1057 = vmatmul.msk.f32.gmra.mxu3 %vm62_vm0, %v872_v41 }
 0xa98   :  { %v964_v42 = vpop.xlane.xlu0 %963 }
 0xa99   :  { %v968_v43 = vmul.f32 %v964_v42, %v1409_v24 }
 0xa9b   :  { %v970_v45 = vadd.f32 1e-05, %v968_v43 }
 0xa9d   :  { %1119 = vrsqrt.f32 %v970_v45  ;;  %vm978_vm11 = vweird.f32 %v970_v45 }
 0xaa3   :  { %v1120_v46 = vpop.eup %1119 }
 0xaa4   :  { %v973_v47 = vmul.f32 %v1120_v46, %v970_v45  ;;  %vm979_vm10 = vweird.f32 %v1120_v46 }
 0xaa5   :  { %vm980_vm12 = vmor %vm978_vm11, %vm979_vm10 }
 0xaa6   :  { %v974_v48 = vmul.f32 %v1120_v46, %v973_v47 }
 0xaa8   :  { %v975_v50 = vmul.f32 0.5, %v974_v48 }
 0xaaa   :  { %v976_v51 = vsub.f32 1.5, %v975_v50 }
 0xaac   :  { %v977_v53 = vmul.f32 %v1120_v46, %v976_v51 }
 0xaae   :  { %v981_v54 = vsel %vm980_vm12, %v1120_v46, %v977_v53 }
 0xaaf   :  { %v992_v52 = vmul.f32 %v981_v54, %v958_v27 }
 0xab1   :  { %v995_v56 = vmul.f32 %v994_v49, %v992_v52 }
 0xab3   :  { %v998_v57 = vadd.f32 %v997_v55, %v995_v56 }
 0xab5   :  { %1000 = vst.msk [vmem:[#allocation7] sm:$0xff] %vm62_vm0, %v998_v57 }
 0xad2   :  { %v904_v58 = vpop.f32.mrf.mxu3 }
 0xad3   :  { %v905_v59 = vadd.f32 %v904_v58, %v877_v10 }
 0xad5   :  { %v908_v60 = vmax.f32 %v905_v59, 0.0 }
 0xad7   :  { %1059 = vmatmul.msk.f32.gmra.mxu0 %vm918_vm6, %v908_v60 }
 0xb54   :  { %v945_v61 = vpop.f32.mrf.mxu0 }
 0xb55   :  { %v946_v0 = vadd.f32 %v945_v61, %v917_v17 }
 0xb57   :  { %v949_v1 = vadd.f32 %v946_v0, %v872_v41 }
 0xb59   :  { %v953_v2 = vsel %vm62_vm0, %v949_v1, 0.0 }
 0xb5a   :  { %954 = vadd.xlane.f32.xlu1 %v953_v2 }
 0xbcd   :  { %v955_v6 = vpop.xlane.xlu1 %954 }
 0xbce   :  { %v957_v11 = vmul.f32 %v955_v6, %v1409_v24 }
 0xbd0   :  { %v959_v12 = vsub.f32 %v949_v1, %v957_v11 }
 0xbd2   :  { %v961_v62 = vmul.f32 %v959_v12, %v959_v12 }
 0xbd4   :  { %v965_v3 = vsel %vm62_vm0, %v961_v62, 0.0 }
 0xbd5   :  { %966 = vadd.xlane.f32.xlu2 %v965_v3 }
 0xc48   :  { %v967_v7 = vpop.xlane.xlu2 %966 }
 0xc49   :  { %v969_v5 = vmul.f32 %v967_v7, %v1409_v24 }
 0xc4b   :  { %v971_v10 = vadd.f32 1e-05, %v969_v5 }
 0xc4d   :  { %1121 = vrsqrt.f32 %v971_v10  ;;  %vm988_vm14 = vweird.f32 %v971_v10 }
 0xc53   :  { %v1122_v13 = vpop.eup %1121 }
 0xc54   :  { %v983_v4 = vmul.f32 %v1122_v13, %v971_v10  ;;  %vm989_vm13 = vweird.f32 %v1122_v13 }
 0xc55   :  { %vm990_vm15 = vmor %vm988_vm14, %vm989_vm13 }
 0xc56   :  { %v984_v14 = vmul.f32 %v1122_v13, %v983_v4 }
 0xc58   :  { %v985_v15 = vmul.f32 0.5, %v984_v14 }
 0xc5a   :  { %v986_v16 = vsub.f32 1.5, %v985_v15 }
 0xc5c   :  { %v987_v17 = vmul.f32 %v1122_v13, %v986_v16 }
 0xc5e   :  { %v991_v18 = vsel %vm990_vm15, %v1122_v13, %v987_v17 }
 0xc5f   :  { %v993_v19 = vmul.f32 %v991_v18, %v959_v12 }
 0xc61   :  { %v996_v24 = vmul.f32 %v994_v49, %v993_v19 }
 0xc63   :  { %v999_v20 = vadd.f32 %v997_v55, %v996_v24 }
 0xc65   :  { %1001 = vst.msk [vmem:[#allocation7 + $0x8] sm:$0xff] %vm62_vm0, %v999_v20 }
 0xc66   :  { %1014 = dma.vmem_to_hbm [thread:$0]  %s1007_s8, 256, %s1009_s2, [#allocation4], %s1202_s29, %s1202_s29, %s1203_s30  }
 0xc67   :  { %1199 = dma.done.wait [#allocation4], 256  }
 0xc68   :  { %1200 = vsyncadd [#allocation4], 4294967040 }
 0xc69   :  { %1019 = vsyncpa [#allocation3], 1 }
 0xc6a   :  { %1020 = vsyncpa [#allocation6], 1 }
 0xc6b   :  { %1021 = vsyncpa [#allocation4], 1 }

</bundles_post_ra>
